<compile_context>
chip_gen: v7x
topology: tpu7x:2x2x1
jax: 0.10.0
libtpu: 0.0.40
codegen_flags: <defaults>
</compile_context>

<pallas_src>
import functools

import numpy as np
import jax
import jax.numpy as jnp
from jax.experimental import pallas as pl
from jax.experimental.pallas import tpu as pltpu


# ----------------------------------------------------------------------------
# Pallas kernel
# ----------------------------------------------------------------------------
def _psf_kernel(tm, nz, l_ref, f_ref, phi_ref, out_ref):
    lhs = l_ref[...]                     # (2*Nz, K)  bf16
    rhs = f_ref[0]                       # (K, 3*TM)  bf16  [F0 | -2*F1 | F2]^T

    # One MXU contraction per tile, f32 accumulation.
    r = jnp.dot(lhs, rhs, preferred_element_type=jnp.float32)   # (2*Nz, 3*TM)

    i0 = r[:, 0 * tm:1 * tm]             # (2*Nz, TM)
    i1 = r[:, 1 * tm:2 * tm]
    i2 = r[:, 2 * tm:3 * tm]

    phi = phi_ref[...]                   # (3, TM) f32
    c2 = phi[0:1, :]                     # cos(2*Phi)
    s2 = phi[1:2, :]                     # sin(2*Phi)
    c1 = phi[2:3, :]                     # cos(Phi)

    # LHS rows [0:Nz]  = -A*w*sin(phase)  ->  lo = -A * Im(I_n)
    # LHS rows [Nz:2Nz] = A*w*cos(phase)  ->  hi =  A * Re(I_n)
    out_ref[0, 0, :, :] = i0[:nz] + i2[:nz] * c2      # Re(Ex) = -A*(ImI0 + ImI2*c2)
    out_ref[1, 0, :, :] = i0[nz:] + i2[nz:] * c2      # Im(Ex) =  A*(ReI0 + ReI2*c2)
    out_ref[0, 1, :, :] = i2[:nz] * s2                # Re(Ey)
    out_ref[1, 1, :, :] = i2[nz:] * s2                # Im(Ey)
    out_ref[0, 2, :, :] = i1[nz:] * c1                # Re(Ez)   (F1 pre-scaled by -2)
    out_ref[1, 2, :, :] = -(i1[:nz] * c1)             # Im(Ez)


def psf_pallas_call(lhs, F_blocked, phi_terms, *, tm, nz, m_pad):
    n_tiles, K, _ = F_blocked.shape
    kern = functools.partial(_psf_kernel, tm, nz)
    return pl.pallas_call(
        kern,
        grid=(n_tiles,),
        in_specs=[
            pl.BlockSpec((2 * nz, K), lambda i: (0, 0)),       # LHS (resident)
            pl.BlockSpec((1, K, 3 * tm), lambda i: (i, 0, 0)),  # F tile
            pl.BlockSpec((3, tm), lambda i: (0, i)),            # Phi terms
        ],
        out_specs=pl.BlockSpec((2, 3, nz, tm), lambda i: (0, 0, 0, i)),
        out_shape=jax.ShapeDtypeStruct((2, 3, nz, m_pad), jnp.float32),
        compiler_params=pltpu.CompilerParams(
            dimension_semantics=("parallel",),
            vmem_limit_bytes=48 * 1024 * 1024),
    )(lhs, F_blocked, phi_terms)


@functools.partial(jax.jit, static_argnames=("tm", "nz", "nx", "ny"))
def psf_forward(abberations, F_blocked, phi_terms, costh, aw, U, *, tm, nz, nx, ny):
    # Tiny (K, Nz) propagator built in XLA (hoisted out of the per-tile body);
    # trapezoid weights and the scalar A are folded in via `aw = A * w_trapz`.
    phase = abberations[:, None] - costh[:, None] * U[None, :]     # (K, Nz)
    cr = (aw[:, None] * jnp.cos(phase)).T                          # (Nz, K) =  A*w*cos
    ci = (aw[:, None] * jnp.sin(phase)).T                          # (Nz, K) =  A*w*sin
    lhs = jnp.concatenate([-ci, cr], axis=0).astype(jnp.bfloat16)  # (2*Nz, K)

    m_pad = phi_terms.shape[1]
    out = psf_pallas_call(lhs, F_blocked, phi_terms, tm=tm, nz=nz, m_pad=m_pad)

    m = nx * ny
    out = out[:, :, :, :m]                                         # (2, 3, Nz, M)
    psf = (out[0] + 1j * out[1]).astype(jnp.complex64)             # (3, Nz, M)
    psf = jnp.transpose(psf, (0, 2, 1)).reshape(3, nx, ny, nz)     # (3, Nx, Ny, Nz)
    return psf


# ----------------------------------------------------------------------------
# Init-time precompute (numpy glue; mirrors psf_model.__init__ / init_psf_params)
# ----------------------------------------------------------------------------
def _bessel_jn(n, x, num=800):
    # J_n(x) = (1/pi) * int_0^pi cos(n*t - x*sin(t)) dt, trapezoid rule.
    # (replaces scipy.special.jv; init-time precompute only)
    x = np.asarray(x, dtype=np.float64)
    acc = np.zeros_like(x)
    dt = np.pi / num
    for i in range(num + 1):
        t = i * dt
        wgt = 0.5 if (i == 0 or i == num) else 1.0
        acc = acc + wgt * np.cos(n * t - x * np.sin(t))
    return acc * dt / np.pi


def _calculate_phi(npxls):
    N = (npxls - 1) / 2
    a = np.arange(-N, N + 1, dtype=np.float64)
    X = np.tile(a[None, :], (npxls, 1))
    Y = np.tile(-a[:, None], (1, npxls))
    return np.arctan2(Y, X)


def build_psf_model(NA, Rindex, lambda_, dx, dy, dz, Nx, Ny, Nz, Ntheta=400):
    assert Nx == Ny, "Nx != Ny -> Phi calculation wrong"
    alpha = float(np.arcsin(NA / Rindex))
    x = dx * np.arange(-Nx // 2 + 1, Nx // 2 + 1, dtype=np.float64)
    y = dy * np.arange(-Ny // 2 + 1, Ny // 2 + 1, dtype=np.float64)
    z = dz * np.arange(-Nz // 2 + 1, Nz // 2 + 1, dtype=np.float64)
    dtheta = alpha / Ntheta
    theta = np.arange(Ntheta, dtype=np.float64) * dtheta
    Phi = _calculate_phi(Nx)                                     # (Nx, Ny)
    A = np.pi / lambda_

    X, Y, THETA = np.meshgrid(x, y, theta, indexing="ij")        # (Nx, Ny, Nt)
    V = 2 * np.pi / lambda_ * np.sqrt(X ** 2 + Y ** 2)
    arg = V * np.sin(THETA)
    J0 = _bessel_jn(0, arg)
    J1 = _bessel_jn(1, arg)
    J2 = _bessel_jn(2, arg)
    ct, st = np.cos(THETA), np.sin(THETA)
    Func0 = np.sqrt(ct) * st * (1 + ct) * J0
    Func1 = np.sqrt(ct) * st ** 2 * J1
    Func2 = np.sqrt(ct) * st * (1 - ct) * J2
    U = 2 * np.pi / lambda_ * z                                  # (Nz,)

    # trapezoid weights for uniform theta grid (== torch.trapz(x=theta))
    w_trapz = np.full((Ntheta,), dtheta, dtype=np.float64)
    w_trapz[0] *= 0.5
    w_trapz[-1] *= 0.5

    return dict(alpha=alpha, theta=theta, Phi=Phi, A=A, U=U,
                Func0=Func0, Func1=Func1, Func2=Func2, w_trapz=w_trapz)


def _choose_tm(M):
    # Big enough to amortize per-grid-step overhead; small enough that the
    # double-buffered bf16 F tile (2 * K * 3*TM * 2B ~= 9.8 MB at TM=2048)
    # fits comfortably inside v7x's 64 MiB VMEM (and v5e/v6e a fortiori).
    if M >= 2048:
        return 2048
    return 128


def pack_inputs(p, Nx, Ny, Ntheta, tm):
    """Pre-pack F0/F1/F2 into lane-dense per-tile blocks + stacked Phi terms."""
    M = Nx * Ny
    m_pad = ((M + tm - 1) // tm) * tm
    n_tiles = m_pad // tm
    K = Ntheta

    def padT(F, scale=1.0):
        FT = np.zeros((K, m_pad), dtype=np.float64)
        FT[:, :M] = scale * F.reshape(M, K).T
        return FT

    F0T = padT(p["Func0"])
    F1T = padT(p["Func1"], -2.0)          # fold Ez's factor -2 into F1
    F2T = padT(p["Func2"])

    F_blocked = np.empty((n_tiles, K, 3 * tm), dtype=np.float64)
    for i in range(n_tiles):
        sl = slice(i * tm, (i + 1) * tm)
        F_blocked[i, :, 0 * tm:1 * tm] = F0T[:, sl]
        F_blocked[i, :, 1 * tm:2 * tm] = F1T[:, sl]
        F_blocked[i, :, 2 * tm:3 * tm] = F2T[:, sl]

    phi_flat = p["Phi"].reshape(M)
    phi_terms = np.zeros((3, m_pad), dtype=np.float32)
    phi_terms[0, :M] = np.cos(2 * phi_flat)
    phi_terms[1, :M] = np.sin(2 * phi_flat)
    phi_terms[2, :M] = np.cos(phi_flat)

    return dict(
        F_blocked=jnp.asarray(F_blocked, jnp.bfloat16),
        phi_terms=jnp.asarray(phi_terms, jnp.float32),
        costh=jnp.asarray(np.cos(p["theta"]), jnp.float32),
        aw=jnp.asarray(p["A"] * p["w_trapz"], jnp.float32),   # fold A into weights
        U=jnp.asarray(p["U"], jnp.float32),
        m_pad=m_pad,
        n_tiles=n_tiles,
    )


# ----------------------------------------------------------------------------
# main
# ----------------------------------------------------------------------------
if __name__ == "__main__":
    # small, module-consistent shapes
    NA, Rindex, lambda_ = 0.8, 1.33, 0.5
    dx = dy = 0.1
    dz = 0.2
    Nx = Ny = 16
    Nz = 8
    Ntheta = 400                      # fixed by the module

    p = build_psf_model(NA, Rindex, lambda_, dx, dy, dz, Nx, Ny, Nz, Ntheta)
    M = Nx * Ny
    tm = _choose_tm(M)
    packed = pack_inputs(p, Nx, Ny, Ntheta, tm)

    # the module's only learnable parameter (init'd to zeros in torch);
    # use small deterministic random values so the phase term is nontrivial.
    key = jax.random.PRNGKey(0)
    abberations = 0.05 * jax.random.normal(key, (Ntheta,), dtype=jnp.float32)

    PSF_3D = psf_forward(abberations, packed["F_blocked"], packed["phi_terms"],
                         packed["costh"], packed["aw"], packed["U"],
                         tm=tm, nz=Nz, nx=Nx, ny=Ny)
    PSF_3D = jax.block_until_ready(PSF_3D)
    assert PSF_3D.shape == (3, Nx, Ny, Nz) and PSF_3D.dtype == jnp.complex64

    # --- float64 numpy reference (same math as the torch forward) ---
    abbr64 = np.asarray(abberations, dtype=np.float64)
    C = p["w_trapz"][:, None] * np.exp(
        1j * (abbr64[:, None] - p["U"][None, :] * np.cos(p["theta"])[:, None]))
    I0 = p["Func0"].reshape(M, Ntheta) @ C
    I1 = p["Func1"].reshape(M, Ntheta) @ C
    I2 = p["Func2"].reshape(M, Ntheta) @ C
    c2 = np.cos(2 * p["Phi"]).reshape(M, 1)
    s2 = np.sin(2 * p["Phi"]).reshape(M, 1)
    c1 = np.cos(p["Phi"]).reshape(M, 1)
    A = p["A"]
    Ex = 1j * A * (I0 + I2 * c2)
    Ey = 1j * A * I2 * s2
    Ez = -2 * A * I1 * c1
    ref = np.stack([Ex, Ey, Ez]).reshape(3, Nx, Ny, Nz)

    err = np.max(np.abs(np.asarray(PSF_3D) - ref))
    scale = np.max(np.abs(ref)) + 1e-30
    assert err <= 2e-2 * scale, f"max abs err {err} vs scale {scale}"

    print("KERNEL_OK")
</pallas_src>

<mosaic_0001>
module attributes {stable_mosaic.version = 11 : i64} {
  func.func @_psf_kernel(%arg0: i32, %arg1: memref<16x400xbf16, #tpu.memory_space<vmem>>, %arg2: memref<1x400x384xbf16, #tpu.memory_space<vmem>>, %arg3: memref<3x128xf32, #tpu.memory_space<vmem>>, %arg4: memref<2x3x8x128xf32, #tpu.memory_space<vmem>>) attributes {dimension_semantics = [#tpu.dimension_semantics<parallel>], iteration_bounds = array<i64: 2>, scalar_prefetch = 0 : i64, scratch_operands = 0 : i64, tpu.core_type = #tpu.core_type<tc>, window_params = [{pipeline_mode = #tpu.pipeline_mode<synchronous>, transform_indices = @transform_0, window_bounds = array<i64: 16, 400>}, {transform_indices = @transform_1, window_bounds = array<i64: 1, 400, 384>}, {transform_indices = @transform_2, window_bounds = array<i64: 3, 128>}, {transform_indices = @transform_3, window_bounds = array<i64: 2, 3, 8, 128>}]} {
    %c0 = arith.constant 0 : index
    %c0_0 = arith.constant 0 : index
    %0 = vector.load %arg1[%c0, %c0_0] : memref<16x400xbf16, #tpu.memory_space<vmem>>, vector<16x400xbf16>
    %c0_1 = arith.constant 0 : index
    %c0_2 = arith.constant 0 : index
    %c0_3 = arith.constant 0 : index
    %1 = vector.load %arg2[%c0_1, %c0_2, %c0_3] : memref<1x400x384xbf16, #tpu.memory_space<vmem>>, vector<1x400x384xbf16>
    %2 = vector.shape_cast %1 : vector<1x400x384xbf16> to vector<400x384xbf16>
    %cst = arith.constant dense<0.000000e+00> : vector<16x384xf32>
    %3 = tpu.matmul %0, %2, %cst {dimension_numbers = #tpu.dot_dimension_numbers<[1], [0], [0], [1], [0, 0, 1, 1], [], []>} : vector<16x400xbf16>, vector<400x384xbf16>, vector<16x384xf32> -> vector<16x384xf32>
    %4 = vector.extract_strided_slice %3 {offsets = [0, 0], sizes = [16, 128], strides = [1, 1]} : vector<16x384xf32> to vector<16x128xf32>
    %5 = vector.extract_strided_slice %3 {offsets = [0, 128], sizes = [16, 128], strides = [1, 1]} : vector<16x384xf32> to vector<16x128xf32>
    %6 = vector.extract_strided_slice %3 {offsets = [0, 256], sizes = [16, 128], strides = [1, 1]} : vector<16x384xf32> to vector<16x128xf32>
    %c0_4 = arith.constant 0 : index
    %c0_5 = arith.constant 0 : index
    %7 = vector.load %arg3[%c0_4, %c0_5] : memref<3x128xf32, #tpu.memory_space<vmem>>, vector<3x128xf32>
    %8 = vector.extract_strided_slice %7 {offsets = [0, 0], sizes = [1, 128], strides = [1, 1]} : vector<3x128xf32> to vector<1x128xf32>
    %9 = vector.extract_strided_slice %7 {offsets = [1, 0], sizes = [1, 128], strides = [1, 1]} : vector<3x128xf32> to vector<1x128xf32>
    %10 = vector.extract_strided_slice %7 {offsets = [2, 0], sizes = [1, 128], strides = [1, 1]} : vector<3x128xf32> to vector<1x128xf32>
    %11 = vector.extract_strided_slice %4 {offsets = [0, 0], sizes = [8, 128], strides = [1, 1]} : vector<16x128xf32> to vector<8x128xf32>
    %12 = vector.extract_strided_slice %6 {offsets = [0, 0], sizes = [8, 128], strides = [1, 1]} : vector<16x128xf32> to vector<8x128xf32>
    %13 = vector.broadcast %8 : vector<1x128xf32> to vector<8x128xf32>
    %14 = arith.mulf %12, %13 : vector<8x128xf32>
    %15 = arith.addf %11, %14 : vector<8x128xf32>
    %c0_6 = arith.constant 0 : index
    %c0_7 = arith.constant 0 : index
    %c0_8 = arith.constant 0 : index
    %c0_9 = arith.constant 0 : index
    %16 = vector.load %arg4[%c0_6, %c0_7, %c0_8, %c0_9] : memref<2x3x8x128xf32, #tpu.memory_space<vmem>>, vector<1x1x8x128xf32>
    %17 = vector.shape_cast %16 : vector<1x1x8x128xf32> to vector<8x128xf32>
    %18 = vector.shape_cast %15 : vector<8x128xf32> to vector<1x1x8x128xf32>
    tpu.vector_store %arg4[%c0_6, %c0_7, %c0_8, %c0_9], %18 {strides = array<i32>} : memref<2x3x8x128xf32, #tpu.memory_space<vmem>>, vector<1x1x8x128xf32>,
    %19 = vector.extract_strided_slice %4 {offsets = [8, 0], sizes = [8, 128], strides = [1, 1]} : vector<16x128xf32> to vector<8x128xf32>
    %20 = vector.extract_strided_slice %6 {offsets = [8, 0], sizes = [8, 128], strides = [1, 1]} : vector<16x128xf32> to vector<8x128xf32>
    %21 = vector.broadcast %8 : vector<1x128xf32> to vector<8x128xf32>
    %22 = arith.mulf %20, %21 : vector<8x128xf32>
    %23 = arith.addf %19, %22 : vector<8x128xf32>
    %c1 = arith.constant 1 : index
    %c0_10 = arith.constant 0 : index
    %c0_11 = arith.constant 0 : index
    %c0_12 = arith.constant 0 : index
    %24 = vector.load %arg4[%c1, %c0_10, %c0_11, %c0_12] : memref<2x3x8x128xf32, #tpu.memory_space<vmem>>, vector<1x1x8x128xf32>
    %25 = vector.shape_cast %24 : vector<1x1x8x128xf32> to vector<8x128xf32>
    %26 = vector.shape_cast %23 : vector<8x128xf32> to vector<1x1x8x128xf32>
    tpu.vector_store %arg4[%c1, %c0_10, %c0_11, %c0_12], %26 {strides = array<i32>} : memref<2x3x8x128xf32, #tpu.memory_space<vmem>>, vector<1x1x8x128xf32>,
    %27 = vector.extract_strided_slice %6 {offsets = [0, 0], sizes = [8, 128], strides = [1, 1]} : vector<16x128xf32> to vector<8x128xf32>
    %28 = vector.broadcast %9 : vector<1x128xf32> to vector<8x128xf32>
    %29 = arith.mulf %27, %28 : vector<8x128xf32>
    %c0_13 = arith.constant 0 : index
    %c1_14 = arith.constant 1 : index
    %c0_15 = arith.constant 0 : index
    %c0_16 = arith.constant 0 : index
    %30 = vector.load %arg4[%c0_13, %c1_14, %c0_15, %c0_16] : memref<2x3x8x128xf32, #tpu.memory_space<vmem>>, vector<1x1x8x128xf32>
    %31 = vector.shape_cast %30 : vector<1x1x8x128xf32> to vector<8x128xf32>
    %32 = vector.shape_cast %29 : vector<8x128xf32> to vector<1x1x8x128xf32>
    tpu.vector_store %arg4[%c0_13, %c1_14, %c0_15, %c0_16], %32 {strides = array<i32>} : memref<2x3x8x128xf32, #tpu.memory_space<vmem>>, vector<1x1x8x128xf32>,
    %33 = vector.extract_strided_slice %6 {offsets = [8, 0], sizes = [8, 128], strides = [1, 1]} : vector<16x128xf32> to vector<8x128xf32>
    %34 = vector.broadcast %9 : vector<1x128xf32> to vector<8x128xf32>
    %35 = arith.mulf %33, %34 : vector<8x128xf32>
    %c1_17 = arith.constant 1 : index
    %c1_18 = arith.constant 1 : index
    %c0_19 = arith.constant 0 : index
    %c0_20 = arith.constant 0 : index
    %36 = vector.load %arg4[%c1_17, %c1_18, %c0_19, %c0_20] : memref<2x3x8x128xf32, #tpu.memory_space<vmem>>, vector<1x1x8x128xf32>
    %37 = vector.shape_cast %36 : vector<1x1x8x128xf32> to vector<8x128xf32>
    %38 = vector.shape_cast %35 : vector<8x128xf32> to vector<1x1x8x128xf32>
    tpu.vector_store %arg4[%c1_17, %c1_18, %c0_19, %c0_20], %38 {strides = array<i32>} : memref<2x3x8x128xf32, #tpu.memory_space<vmem>>, vector<1x1x8x128xf32>,
    %39 = vector.extract_strided_slice %5 {offsets = [8, 0], sizes = [8, 128], strides = [1, 1]} : vector<16x128xf32> to vector<8x128xf32>
    %40 = vector.broadcast %10 : vector<1x128xf32> to vector<8x128xf32>
    %41 = arith.mulf %39, %40 : vector<8x128xf32>
    %c0_21 = arith.constant 0 : index
    %c2 = arith.constant 2 : index
    %c0_22 = arith.constant 0 : index
    %c0_23 = arith.constant 0 : index
    %42 = vector.load %arg4[%c0_21, %c2, %c0_22, %c0_23] : memref<2x3x8x128xf32, #tpu.memory_space<vmem>>, vector<1x1x8x128xf32>
    %43 = vector.shape_cast %42 : vector<1x1x8x128xf32> to vector<8x128xf32>
    %44 = vector.shape_cast %41 : vector<8x128xf32> to vector<1x1x8x128xf32>
    tpu.vector_store %arg4[%c0_21, %c2, %c0_22, %c0_23], %44 {strides = array<i32>} : memref<2x3x8x128xf32, #tpu.memory_space<vmem>>, vector<1x1x8x128xf32>,
    %45 = vector.extract_strided_slice %5 {offsets = [0, 0], sizes = [8, 128], strides = [1, 1]} : vector<16x128xf32> to vector<8x128xf32>
    %46 = vector.broadcast %10 : vector<1x128xf32> to vector<8x128xf32>
    %47 = arith.mulf %45, %46 : vector<8x128xf32>
    %cst_24 = arith.constant 0.000000e+00 : f32
    %48 = vector.broadcast %cst_24 : f32 to vector<8x128xf32>
    %49 = arith.subf %48, %47 : vector<8x128xf32>
    %c1_25 = arith.constant 1 : index
    %c2_26 = arith.constant 2 : index
    %c0_27 = arith.constant 0 : index
    %c0_28 = arith.constant 0 : index
    %50 = vector.load %arg4[%c1_25, %c2_26, %c0_27, %c0_28] : memref<2x3x8x128xf32, #tpu.memory_space<vmem>>, vector<1x1x8x128xf32>
    %51 = vector.shape_cast %50 : vector<1x1x8x128xf32> to vector<8x128xf32>
    %52 = vector.shape_cast %49 : vector<8x128xf32> to vector<1x1x8x128xf32>
    tpu.vector_store %arg4[%c1_25, %c2_26, %c0_27, %c0_28], %52 {strides = array<i32>} : memref<2x3x8x128xf32, #tpu.memory_space<vmem>>, vector<1x1x8x128xf32>,
    return
  }
  func.func @transform_0(%arg0: i32) -> (i32, i32) {
    %c0_i32 = arith.constant 0 : i32
    %c0_i32_0 = arith.constant 0 : i32
    %c0_i32_1 = arith.constant 0 : i32
    return %c0_i32, %c0_i32_0 : i32, i32
  }
  func.func @transform_1(%arg0: i32) -> (i32, i32, i32) {
    %c0_i32 = arith.constant 0 : i32
    %c0_i32_0 = arith.constant 0 : i32
    %c0_i32_1 = arith.constant 0 : i32
    return %arg0, %c0_i32, %c0_i32_0 : i32, i32, i32
  }
  func.func @transform_2(%arg0: i32) -> (i32, i32) {
    %c0_i32 = arith.constant 0 : i32
    %c0_i32_0 = arith.constant 0 : i32
    return %c0_i32, %arg0 : i32, i32
  }
  func.func @transform_3(%arg0: i32) -> (i32, i32, i32, i32) {
    %c0_i32 = arith.constant 0 : i32
    %c0_i32_0 = arith.constant 0 : i32
    %c0_i32_1 = arith.constant 0 : i32
    %c0_i32_2 = arith.constant 0 : i32
    return %c0_i32, %c0_i32_0, %c0_i32_1, %arg0 : i32, i32, i32, i32
  }
}

</mosaic_0001>

<bundles_post_ra>
// kernel: custom-call
= control target key start
LH: loop header
LB: loop body
LE: loop exit
PB: predicated region body
PF: predicated region fallthrough
CT: control target
= control target key end

     0   :  { %s126_s0 = inlined_call_operand.vmem [shape: f32[3,16,16,8], index: 0, kind: input, shape index: {}]   ;;  %s127_s1 = inlined_call_operand.vmem [shape: f32[3,16,16,8], index: 1, kind: input, shape index: {}]   ;;  %s128_s2 = inlined_call_operand.hbm [shape: c64[3,16,16,8], index: 2, kind: output, shape index: {}]  }
   0x1   :  { %s87_s11 = scalar_lea.hbm %s128_s2, 6144 }
   0x2   :  { %4 = vsyncpa [#allocation0], 0  ;;  %s5_s14 = sshll.u32 %s126_s0, 4  ;;  %s6_s14 = int_to_ptr.vmem [resolvable:$true] %s5_s14 }
   0x3   :  { %s18_s15 = scalar_lea.vmem %s6_s14, 6144  ;;  %p23_p1 = scmp.lt.s32.totalorder %s6_s14, %s6_s14 }
   0x4   :  { %p19_p0 = scmp.ne.s32.totalorder %s6_s14, %s18_s15  ;;  %p24_p2 = scmp.lt.s32.totalorder %s18_s15, %s18_s15 }
   0x6   :  { %p25_p3 = por %p24_p2, %p23_p1 }
   0x8   :  { %p26_p4 = pnand %p25_p3, %p19_p0 }
   0xa   :  { %29 = shalt.err (!%p26_p4)  }
   0xb   :  { %p31_p5 = scmp.ne.s32.totalorder %s128_s2, %s87_s11  ;;  %s32_s0 = scalar_lea.hbm %s128_s2, 12288 }
   0xc   :  { %p33_p6 = scmp.lt.u32.totalorder %s32_s0, %s87_s11  ;;  %p34_p7 = scmp.lt.u32.totalorder %s87_s11, %s128_s2 }
   0xe   :  { %p35_p8 = por %p34_p7, %p33_p6 }
  0x10   :  { %p36_p9 = pnand %p35_p8, %p31_p5 }
  0x12   :  { %39 = shalt.err (!%p36_p9)  }
  0x13   :  { %8 = dma.vmem_to_hbm [thread:$0]  %s6_s14, 6144, %s128_s2, [#allocation0] }
  0x14   :  { %65 = dma.done.wait [#allocation0], 6144  }
  0x15   :  { %66 = vsyncadd [#allocation0], 4294961152 }
  0x16   :  { %10 = vsyncpa [#allocation0], 1 }
  0x17   :  { %11 = vsyncpa [#allocation1], 0  ;;  %s12_s28 = sshll.u32 %s127_s1, 4  ;;  %s13_s28 = int_to_ptr.vmem [resolvable:$true] %s12_s28 }
  0x18   :  { %s40_s29 = scalar_lea.vmem %s13_s28, 6144  ;;  %p45_p11 = scmp.lt.s32.totalorder %s13_s28, %s13_s28 }
  0x19   :  { %p41_p10 = scmp.ne.s32.totalorder %s13_s28, %s40_s29  ;;  %p46_p12 = scmp.lt.s32.totalorder %s40_s29, %s40_s29 }
  0x1b   :  { %p47_p13 = por %p46_p12, %p45_p11 }
  0x1d   :  { %p48_p0 = pnand %p47_p13, %p41_p10 }
  0x1f   :  { %51 = shalt.err (!%p48_p0)  }
  0x20   :  { %p53_p1 = scmp.ne.s32.totalorder %s87_s11, %s32_s0  ;;  %p56_p2 = scmp.lt.u32.totalorder %s32_s0, %s32_s0 }
  0x22   :  { %p57_p3 = por %p56_p2, %p34_p7 }
  0x24   :  { %p59_p4 = por %p57_p3, %p33_p6 }
  0x26   :  { %p60_p5 = pnand %p59_p4, %p53_p1 }
  0x28   :  { %63 = shalt.err (!%p60_p5)  }
  0x29   :  { %15 = dma.vmem_to_hbm [thread:$0]  %s13_s28, 6144, %s87_s11, [#allocation1] }
  0x2a   :  { %67 = dma.done.wait [#allocation1], 6144  }
  0x2b   :  { %68 = vsyncadd [#allocation1], 4294961152 }
  0x2c   :  { %17 = vsyncpa [#allocation1], 1 }

// kernel: psf_forward.1
= control target key start
LH: loop header
LB: loop body
LE: loop exit
PB: predicated region body
PF: predicated region fallthrough
CT: control target
= control target key end

     0   :  { %8 = vsyncpa [#allocation3], 0  ;;  %s1662_s0 = inlined_call_operand.vmem [shape: bf16[16,400], index: 0, kind: input, shape index: {}]   ;;  %s1663_s1 = inlined_call_operand.hbm [shape: bf16[2,400,384], index: 1, kind: input, shape index: {}]   ;;  %s1664_s2 = inlined_call_operand.vmem [shape: f32[3,256], index: 2, kind: input, shape index: {}]   ;;  %s1665_s3 = inlined_call_operand.vmem [shape: f32[2,3,8,256], index: 3, kind: output, shape index: {}]  }
   0x1   :  { %10 = vsyncpa [#allocation3 + $0x1], 0  ;;  %s1429_s12 = smov 0   ;;  %s1431_s13 = smov 0  }
   0x2   :  { %s1433_s14 = smov 0   ;;  %s1435_s15 = smov 0  }
   0x3 LB: > { %s1448_s16 = sadd.s32 4294967295, %s1403_s15   ;;  %s1451_s17 = sadd.s32 1, %s1403_s15   ;;  %s1403_s15 = sphi %s1435_s15, %s1674_s15   ;;  %s1399_s14 = sphi %s1433_s14, %s1673_s14   ;;  %s1395_s13 = sphi %s1431_s13, %s1672_s13   ;;  %s1391_s12 = sphi %s1429_s12, %s1671_s12  }
   0x4   : > { %s41_s18 = ssub.s32 %s1403_s15, %s1451_s17  ;;  %s44_s19 = sadd.s32 1, %s1399_s14 }
   0x5   : > { %p42_p0 = scmp.eq.s32.totalorder %s41_s18, 0  ;;  %p51_p1 = scmp.ne.s32.totalorder %s1399_s14, %s1395_s13 }
   0x6   : > { %p52_p2 = scmp.eq.s32.totalorder %s1403_s15, 0  ;;  %p57_p3 = scmp.ne.s32.totalorder %s1395_s13, %s1391_s12 }
   0x7   : > { %s1461_s20 = scalar_select %p42_p0, %s1399_s14, %s44_s19  }
   0x8   : > { %p53_p4 = por %p52_p2, %p51_p1  ;;  %p58_p5 = scmp.eq.s32.totalorder %s1448_s16, 0 }
   0x9   : > { %p107_p6 = scmp.eq.s32.totalorder %s1448_s16, 1  ;;  %p1197_p8 = scmp.lt.s32.totalorder %s1403_s15, 2 }
   0xa   : > { %p1465_p7 = por %p58_p5, %p57_p3  ;;  %s136_s23 = sand.u32 1, %s1399_s14  }
   0xb   : > { %p1470_p9 = por %p107_p6, %p51_p1  ;;  %s1187_s24 = smul.u32 600, %s136_s23 }
   0xc   : > { %s1188_s25 = smul.u32 9600, %s1403_s15  ;;  %p1476_p10 = pnand %p1197_p8, %p53_p4 }
   0xd   : > { %s1667_s22 = scalar_select %p1470_p9, 1, 0 }
   0xe   : > { %s1483_s29 = scalar_lea.hbm %s1663_s1, %s1188_s25  ;;  %s140_s30 = scalar_lea.vmem [#allocation2], %s1187_s24 }
   0xf   : > { %s147_s4 = sshll.u32 %s140_s30, 4  ;;  %s1488_s5 = scalar_lea.sflag [#allocation3], %s136_s23  ;;  %s1485_s4 = int_to_ptr.vmem [resolvable:$true] %s147_s4 }
  0x10   : > { %s1339_s6 = scalar_lea.hbm %s1483_s29, 9600  ;;  %p1341_p13 = pneg %p1476_p10 }
  0x11   : > { %p1340_p12 = scmp.ne.s32.totalorder %s1483_s29, %s1339_s6  ;;  %s1344_s9 = scalar_lea.hbm %s1663_s1, 19200 }
  0x12   : > { %p1345_p2 = scmp.lt.u32.totalorder %s1483_s29, %s1663_s1  ;;  %p1346_p3 = scmp.lt.u32.totalorder %s1344_s9, %s1339_s6 }
  0x13   : > { %p1342_p0 = pnand %p1341_p13, %p1340_p12  ;;  %p1348_p5 = scmp.lt.u32.totalorder %s1339_s6, %s1483_s29 }
  0x14   : > { %p1347_p4 = por %p1346_p3, %p1345_p2 }
  0x15   : > { %p1343_p1 = pneg %p1342_p0 }
  0x16   : > { %p1349_p6 = por %p1348_p5, %p1347_p4 }
  0x18   : > { %p1350_p8 = pnand %p1349_p6, %p1343_p1 }
  0x1a   : > { %1353 = shalt.err (!%p1350_p8)
}
  0x1b   : > { %s1354_s12 = scalar_lea.vmem %s1485_s4, 9600  ;;  %s1405_s18 = smov [#allocation2]  }
  0x1c   : > { %p1355_p12 = scmp.ne.s32.totalorder %s1485_s4, %s1354_s12  ;;  %s1359_s19 = sshll.u32 %s1405_s18, 4  ;;  %s1360_s19 = int_to_ptr.vmem [resolvable:$false] %s1359_s19 }
  0x1d   : > { %s1361_s23 = scalar_lea.vmem %s1360_s19, 19200  ;;  %p1362_p9 = scmp.lt.s32.totalorder %s1485_s4, %s1360_s19 }
  0x1e   : > { %p1357_p0 = pnand %p1355_p12, %p1341_p13  ;;  %p1363_p2 = scmp.lt.s32.totalorder %s1361_s23, %s1354_s12 }
  0x20   : > { %p1358_p11 = pneg %p1357_p0  ;;  %p1364_p3 = por %p1363_p2, %p1362_p9 }
  0x22   : > { %p1365_p4 = pnand %p1364_p3, %p1358_p11 }
  0x24   : > { %1368 = shalt.err (!%p1365_p4)
}
  0x25   : > { %s1406_s24 = smov 192   ;;  %s1407_s25 = smov 12  }
  0x26   : > { %1196 = dma.hbm_to_vmem [thread:$0]  (!%p1476_p10), %s1483_s29, 9600, %s1485_s4, %s1488_s5, %s1406_s24, %s1406_s24, %s1407_s25  }
  0x27   : > { %p162_p13 = scmp.lt.s32.totalorder %s1403_s15, 3  ;;  %p1669_p1 = scmp.ge.s32.totalorder %s1403_s15, 1 }
  0x29   : > { %p163_p5 = pnand %p1669_p1, %p162_p13 }
  0x2a   : > { %s1520_s27 = sand.u32 (!%p163_p5), 1, %s1395_s13  }
  0x2b   : > { %166 = sbr.rel (%p163_p5) target bundleno = 378 (0x17a), region = 32  ;;  %s169_s30 = scalar_lea.sflag (!%p163_p5), [#allocation3], %s1520_s27 }
  0x2c   : > { %s1189_s28 = smul.u32 (!%p163_p5), 600, %s1520_s27 }
  0x2e   : > { %s1524_s6 = scalar_lea.vmem (!%p163_p5), [#allocation2], %s1189_s28 }
  0x32   : > { %1386 = dma.done.wait (%p1465_p7), %s169_s30, 9600  }
  0x33   : > { %1388 = vsyncadd (%p1465_p7), %s169_s30, 4294957696  ;;  %v1233_v0 = vld [vmem:[%s1524_s6 + $0x4] ss:$12 sps:$4 sm:$0xff]   ;;  %v1235_v1 = vld [vmem:[%s1524_s6 + $0xc8] ss:$12 sps:$4 sm:$0xff]   ;;  %v1408_v38 = vmov 0  }
  0x34   : > { %730 = vmatprep.subr.bf16.mxu0 %v1233_v0  ;;  %v1236_v2 = vld [vmem:[%s1524_s6] ss:$12 sps:$4 sm:$0xff]   ;;  %1161 = vmatprep.subr.bf16.mxu1 %v1235_v1  ;;  %v1237_v3 = vld [vmem:[%s1524_s6 + $0x8] ss:$12 sps:$4 sm:$0xff]   ;;  %v1241_v6 = vld [vmem:[%s1524_s6 + $0x18] ss:$12 sps:$4 sm:$0xff]  }
  0x35   : > { %731 = vmatpush1.bf16.msra.mxu0 %v1236_v2  ;;  %v1238_v4 = vld [vmem:[%s1524_s6 + $0x1c] ss:$12 sps:$4 sm:$0xff]   ;;  %1162 = vmatpush3.bf16.msra.mxu1 %v1237_v3  ;;  %v1240_v5 = vld [vmem:[%s1524_s6 + $0xe0] ss:$12 sps:$4 sm:$0xff]   ;;  %v1245_v9 = vld [vmem:[%s1524_s6 + $0xf8] ss:$12 sps:$4 sm:$0xff]  }
  0x36   : > { %732 = vmatprep.subr.bf16.mxu0 %v1238_v4  ;;  %v1242_v7 = vld [vmem:[%s1524_s6 + $0x20] ss:$12 sps:$4 sm:$0xff]   ;;  %1163 = vmatprep.subr.bf16.mxu1 %v1240_v5  ;;  %v1246_v10 = vld [vmem:[%s1524_s6 + $0x30] ss:$12 sps:$4 sm:$0xff]   ;;  %v1247_v11 = vld [vmem:[%s1524_s6 + $0x38] ss:$12 sps:$4 sm:$0xff]  }
  0x37   : > { %v1243_v8 = vld [vmem:[%s1524_s6 + $0x34] ss:$12 sps:$4 sm:$0xff]   ;;  %v1248_v12 = vld [vmem:[%s1524_s6 + $0x4c] ss:$12 sps:$4 sm:$0xff]   ;;  %v1250_v13 = vld [vmem:[%s1524_s6 + $0x110] ss:$12 sps:$4 sm:$0xff]  }
  0x38   : > { %v1251_v14 = vld [vmem:[%s1524_s6 + $0x48] ss:$12 sps:$4 sm:$0xff]   ;;  %v1252_v15 = vld [vmem:[%s1524_s6 + $0x50] ss:$12 sps:$4 sm:$0xff]   ;;  %v1256_v18 = vld [vmem:[%s1524_s6 + $0x60] ss:$12 sps:$4 sm:$0xff]  }
  0x39   : > { %733 = vmatpush1.bf16.msra.mxu0 %v1241_v6  ;;  %1164 = vmatpush3.bf16.msra.mxu1 %v1242_v7  ;;  %v1253_v16 = vld [vmem:[%s1524_s6 + $0x64] ss:$12 sps:$4 sm:$0xff]   ;;  %v1255_v17 = vld [vmem:[%s1524_s6 + $0x128] ss:$12 sps:$4 sm:$0xff]   ;;  %v1260_v21 = vld [vmem:[%s1524_s6 + $0x140] ss:$12 sps:$4 sm:$0xff]  }
  0x3a   : > { %734 = vmatprep.subr.bf16.mxu0 %v1243_v8  ;;  %1165 = vmatprep.subr.bf16.mxu1 %v1245_v9  ;;  %v1257_v19 = vld [vmem:[%s1524_s6 + $0x68] ss:$12 sps:$4 sm:$0xff]   ;;  %v1261_v22 = vld [vmem:[%s1524_s6 + $0x78] ss:$12 sps:$4 sm:$0xff]   ;;  %v1262_v23 = vld [vmem:[%s1524_s6 + $0x80] ss:$12 sps:$4 sm:$0xff]  }
  0x3b   : > { %v1258_v20 = vld [vmem:[%s1524_s6 + $0x7c] ss:$12 sps:$4 sm:$0xff]   ;;  %v1263_v24 = vld [vmem:[%s1524_s6 + $0x94] ss:$12 sps:$4 sm:$0xff]   ;;  %v1265_v25 = vld [vmem:[%s1524_s6 + $0x158] ss:$12 sps:$4 sm:$0xff]  }
  0x3c   : > { %v1266_v26 = vld [vmem:[%s1524_s6 + $0x90] ss:$12 sps:$4 sm:$0xff]   ;;  %v1267_v27 = vld [vmem:[%s1524_s6 + $0x98] ss:$12 sps:$4 sm:$0xff]   ;;  %v1271_v30 = vld [vmem:[%s1524_s6 + $0xa8] ss:$12 sps:$4 sm:$0xff]  }
  0x3d   : > { %735 = vmatpush1.bf16.msra.mxu0 %v1246_v10  ;;  %1166 = vmatpush3.bf16.msra.mxu1 %v1247_v11  ;;  %v1268_v28 = vld [vmem:[%s1524_s6 + $0xac] ss:$12 sps:$4 sm:$0xff]   ;;  %v1270_v29 = vld [vmem:[%s1524_s6 + $0x170] ss:$12 sps:$4 sm:$0xff]   ;;  %v1279_v36 = vld [vmem:[%s1524_s6 + $0x188] ss:$12 sps:$4 sm:$0xff]  }
  0x3e   : > { %736 = vmatprep.subr.bf16.mxu0 %v1248_v12  ;;  %1167 = vmatprep.subr.bf16.mxu1 %v1250_v13  ;;  %v1272_v31 = vld [vmem:[%s1524_s6 + $0xb0] ss:$12 sps:$4 sm:$0xff]   ;;  %v1278_v35 = vld [vmem:[%s1524_s6 + $0xc0] ss:$12 sps:$4 sm:$0xff]   ;;  %v1282_v39 = vld [vmem:[%s1524_s6 + $0xd8] ss:$12 sps:$4 sm:$0xff]  }
  0x3f   : > { %v1277_v32 = vld [vmem:[%s1662_s0 + $0x4] ss:$16 sps:$4 sm:$0xff]   ;;  %v1569_v34 = vld [vmem:[%s1662_s0] ss:$16 sps:$4 sm:$0xff]   ;;  %vm726_vm0 = vcmask 130048   ;;  %p198_p7 = scmp.lt.s32.totalorder %s1448_s16, 1 }
  0x40   : > { %v1273_v33 = vld [vmem:[%s1524_s6 + $0xc4] ss:$12 sps:$4 sm:$0xff]   ;;  %848 = vmatprep.mubr.bf16.mxu1 %v1277_v32  ;;  %762 = vmatprep.mubr.bf16.mxu0 %v1277_v32  ;;  %v1280_v37 = vld [vmem:[%s1524_s6 + $0xdc] ss:$12 sps:$4 sm:$0xff]   ;;  %v1283_v40 = vld [vmem:[%s1524_s6 + $0x1a0] ss:$12 sps:$4 sm:$0xff]  }
  0x41   : > { %737 = vmatpush1.bf16.msra.mxu0 %v1251_v14  ;;  %1168 = vmatpush3.bf16.msra.mxu1 %v1252_v15  ;;  %v1284_v41 = vld [vmem:[%s1524_s6 + $0xf4] ss:$12 sps:$4 sm:$0xff]   ;;  %v1286_v42 = vld [vmem:[%s1524_s6 + $0xf0] ss:$12 sps:$4 sm:$0xff]   ;;  %v1287_v43 = vld [vmem:[%s1524_s6 + $0x1b8] ss:$12 sps:$4 sm:$0xff]  }
  0x42   : > { %738 = vmatprep.subr.bf16.mxu0 %v1253_v16  ;;  %1169 = vmatprep.subr.bf16.mxu1 %v1255_v17  ;;  %v1288_v44 = vld [vmem:[%s1524_s6 + $0x10c] ss:$12 sps:$4 sm:$0xff]   ;;  %v1290_v45 = vld [vmem:[%s1524_s6 + $0x108] ss:$12 sps:$4 sm:$0xff]   ;;  %v1291_v46 = vld [vmem:[%s1524_s6 + $0x1d0] ss:$12 sps:$4 sm:$0xff]  }
  0x43   : > { %v1292_v47 = vld [vmem:[%s1524_s6 + $0x124] ss:$12 sps:$4 sm:$0xff]   ;;  %v1294_v48 = vld [vmem:[%s1524_s6 + $0x120] ss:$12 sps:$4 sm:$0xff]   ;;  %v1295_v49 = vld [vmem:[%s1524_s6 + $0x1e8] ss:$12 sps:$4 sm:$0xff]  }
  0x44   : > { %v1296_v50 = vld [vmem:[%s1524_s6 + $0x13c] ss:$12 sps:$4 sm:$0xff]   ;;  %v1298_v52 = vld [vmem:[%s1524_s6 + $0x138] ss:$12 sps:$4 sm:$0xff]   ;;  %v1299_v53 = vld [vmem:[%s1524_s6 + $0x200] ss:$12 sps:$4 sm:$0xff]  }
  0x45   : > { %739 = vmatpush1.bf16.msra.mxu0 %v1256_v18  ;;  %1170 = vmatpush3.bf16.msra.mxu1 %v1257_v19  ;;  %v1312_v51 = vld [vmem:[%s1662_s0 + $0xc] ss:$16 sps:$4 sm:$0xff]   ;;  %v1317_v1 = vld [vmem:[%s1662_s0 + $0x8] ss:$16 sps:$4 sm:$0xff]   ;;  %s199_s9 = scalar_select %p198_p7, %s1448_s16, 1 }
  0x46   : > { %740 = vmatprep.subr.bf16.mxu0 %v1258_v20  ;;  %1171 = vmatprep.subr.bf16.mxu1 %v1260_v21  ;;  %v1300_v54 = vld [vmem:[%s1524_s6 + $0x154] ss:$12 sps:$4 sm:$0xff]   ;;  %v1302_v55 = vld [vmem:[%s1524_s6 + $0x150] ss:$12 sps:$4 sm:$0xff]   ;;  %v1303_v56 = vld [vmem:[%s1524_s6 + $0x218] ss:$12 sps:$4 sm:$0xff]  }
  0x47   : > { %v1304_v57 = vld [vmem:[%s1524_s6 + $0x16c] ss:$12 sps:$4 sm:$0xff]   ;;  %v1306_v58 = vld [vmem:[%s1524_s6 + $0x168] ss:$12 sps:$4 sm:$0xff]   ;;  %v1307_v59 = vld [vmem:[%s1524_s6 + $0x230] ss:$12 sps:$4 sm:$0xff]  }
  0x48   : > { %v1310_v60 = vld [vmem:[%s1524_s6 + $0x184] ss:$12 sps:$4 sm:$0xff]   ;;  %v1308_v61 = vld [vmem:[%s1524_s6 + $0x180] ss:$12 sps:$4 sm:$0xff]   ;;  %v1311_v62 = vld [vmem:[%s1524_s6 + $0x248] ss:$12 sps:$4 sm:$0xff]  }
  0x49   : > { %741 = vmatpush1.bf16.msra.mxu0 %v1261_v22  ;;  %1172 = vmatpush3.bf16.msra.mxu1 %v1262_v23  ;;  %v1316_v63 = vld [vmem:[%s1524_s6 + $0x19c] ss:$12 sps:$4 sm:$0xff]   ;;  %v1314_v0 = vld [vmem:[%s1524_s6 + $0x198] ss:$12 sps:$4 sm:$0xff]   ;;  %v1320_v2 = vld [vmem:[%s1524_s6 + $0x1b4] ss:$12 sps:$4 sm:$0xff]   ;;  %v899_v22 = vlaneseq }
  0x4a   : > { %742 = vmatprep.subr.bf16.mxu0 %v1263_v24  ;;  %1173 = vmatprep.subr.bf16.mxu1 %v1265_v25  ;;  %v1318_v3 = vld [vmem:[%s1524_s6 + $0x1b0] ss:$12 sps:$4 sm:$0xff]   ;;  %v1323_v4 = vld [vmem:[%s1524_s6 + $0x1cc] ss:$12 sps:$4 sm:$0xff]   ;;  %v1321_v5 = vld [vmem:[%s1524_s6 + $0x1c8] ss:$12 sps:$4 sm:$0xff]  }
  0x4b   : > { %v1326_v6 = vld [vmem:[%s1524_s6 + $0x1e4] ss:$12 sps:$4 sm:$0xff]   ;;  %v1324_v7 = vld [vmem:[%s1524_s6 + $0x1e0] ss:$12 sps:$4 sm:$0xff]   ;;  %v1329_v8 = vld [vmem:[%s1524_s6 + $0x1fc] ss:$12 sps:$4 sm:$0xff]  }
  0x4c   : > { %v1327_v9 = vld [vmem:[%s1524_s6 + $0x1f8] ss:$12 sps:$4 sm:$0xff]   ;;  %v1332_v10 = vld [vmem:[%s1524_s6 + $0x214] ss:$12 sps:$4 sm:$0xff]   ;;  %v1330_v11 = vld [vmem:[%s1524_s6 + $0x210] ss:$12 sps:$4 sm:$0xff]  }
  0x4d   : > { %743 = vmatpush1.bf16.msra.mxu0 %v1266_v26  ;;  %1174 = vmatpush3.bf16.msra.mxu1 %v1267_v27  ;;  %v1335_v12 = vld [vmem:[%s1524_s6 + $0x22c] ss:$12 sps:$4 sm:$0xff]   ;;  %v1333_v13 = vld [vmem:[%s1524_s6 + $0x228] ss:$12 sps:$4 sm:$0xff]   ;;  %v1338_v14 = vld [vmem:[%s1524_s6 + $0x244] ss:$12 sps:$4 sm:$0xff]  }
  0x4e   : > { %744 = vmatprep.subr.bf16.mxu0 %v1268_v28  ;;  %1175 = vmatprep.subr.bf16.mxu1 %v1270_v29  ;;  %v1336_v15 = vld [vmem:[%s1524_s6 + $0x240] ss:$12 sps:$4 sm:$0xff]   ;;  %s1071_s10 = sshll.u32 %s199_s9, 2  ;;  %v900_v23 = vshrl.u32 %v899_v22, 7  ;;  %s1190_s19 = smul.u32 48, %s1520_s27 }
  0x4f   : > { %s201_s18 = scalar_lea.vmem %s1664_s2, %s1071_s10  ;;  %p1670_p9 = scmp.ne.s32.totalorder %s1667_s22, 0 }
  0x50   : > { %v912_v24 = vsub.s32 1, %v900_v23  ;;  %v898_v25 = vld [vmem:[%s201_s18] sm:$0x7]  ;;  %s1629_s23 = scalar_lea.vmem [#allocation4], %s1190_s19  ;;  %s1158_s24 = sshll.u32 (%p1670_p9), %s1448_s16, 3 }
  0x51   : > { %745 = vmatpush1.bf16.msra.mxu0 %v1271_v30  ;;  %1176 = vmatpush3.bf16.msra.mxu1 %v1272_v31  ;;  %s939_s28 = scalar_lea.vmem (%p1670_p9), %s1665_s3, %s1158_s24 }
  0x52   : > { %746 = vmatprep.subr.bf16.mxu0 %v1273_v33  ;;  %857 = vmatprep.subr.bf16.mxu1 %v1408_v38  ;;  %v913_v26 = vrot.slane %v898_v25, %v912_v24 }
  0x54   : > { %849 = vmatmul.mubr.bf16.vlgmr.msra.gmra.mrb[0].mxu1 %v1569_v34 }
  0x55   : > { %747 = vmatpush1.bf16.msra.mxu0 %v1278_v35  ;;  %858 = vmatpush1.bf16.msra.mxu1 %v1279_v36  ;;  %v901_v35 = vsub.s32 0, %v900_v23  ;;  %v922_v36 = vsub.s32 2, %v900_v23 }
  0x56   : > { %748 = vmatprep.subr.bf16.mxu0 %v1280_v37  ;;  %859 = vmatprep.subr.bf16.mxu1 %v1408_v38 }
  0x57   : > { %1152 = vmatprep.mubr.msk.bf16.mxu1 %vm726_vm0, %v1312_v51  ;;  %v902_v37 = vrot.slane %v898_v25, %v901_v35 }
  0x59   : > { %749 = vmatpush1.bf16.msra.mxu0 %v1282_v39  ;;  %860 = vmatpush1.bf16.msra.mxu1 %v1283_v40 }
  0x5a   : > { %750 = vmatprep.subr.bf16.mxu0 %v1284_v41  ;;  %861 = vmatprep.subr.bf16.mxu1 %v1408_v38 }
  0x5d   : > { %751 = vmatpush1.bf16.msra.mxu0 %v1286_v42  ;;  %862 = vmatpush1.bf16.msra.mxu1 %v1287_v43 }
  0x5e   : > { %752 = vmatprep.subr.bf16.mxu0 %v1288_v44  ;;  %863 = vmatprep.subr.bf16.mxu1 %v1408_v38 }
  0x61   : > { %753 = vmatpush1.bf16.msra.mxu0 %v1290_v45  ;;  %864 = vmatpush1.bf16.msra.mxu1 %v1291_v46 }
  0x62   : > { %754 = vmatprep.subr.bf16.mxu0 %v1292_v47  ;;  %865 = vmatprep.subr.bf16.mxu1 %v1408_v38 }
  0x65   : > { %755 = vmatpush1.bf16.msra.mxu0 %v1294_v48  ;;  %866 = vmatpush1.bf16.msra.mxu1 %v1295_v49 }
  0x66   : > { %756 = vmatprep.subr.bf16.mxu0 %v1296_v50  ;;  %867 = vmatprep.subr.bf16.mxu1 %v1408_v38 }
  0x69   : > { %757 = vmatpush1.bf16.msra.mxu0 %v1298_v52  ;;  %868 = vmatpush1.bf16.msra.mxu1 %v1299_v53 }
  0x6a   : > { %758 = vmatprep.subr.bf16.mxu0 %v1300_v54  ;;  %869 = vmatprep.subr.bf16.mxu1 %v1408_v38 }
  0x6d   : > { %759 = vmatpush1.bf16.msra.mxu0 %v1302_v55  ;;  %870 = vmatpush1.bf16.msra.mxu1 %v1303_v56 }
  0x6e   : > { %760 = vmatprep.subr.bf16.mxu0 %v1304_v57  ;;  %871 = vmatprep.subr.bf16.mxu1 %v1408_v38 }
  0x71   : > { %761 = vmatpush1.bf16.msra.mxu0 %v1306_v58  ;;  %872 = vmatpush1.bf16.msra.mxu1 %v1307_v59 }
  0x72   : > { %773 = vmatprep.subr.bf16.mxu0 %v1310_v60  ;;  %873 = vmatprep.subr.bf16.mxu1 %v1408_v38  ;;  %v923_v38 = vrot.slane %v898_v25, %v922_v36 }
  0x74   : > { %763 = vmatmul.mubr.bf16.vlgmr.msra.gmra.mrb[0].mxu0 %v1569_v34 }
  0x75   : > { %774 = vmatpush1.bf16.msra.mxu0 %v1308_v61  ;;  %1151 = vmatprep.mubr.msk.bf16.mxu0 %vm726_vm0, %v1312_v51 }
  0x76   : > { %874 = vmatpush1.bf16.msra.mxu1 %v1311_v62  ;;  %775 = vmatprep.subr.bf16.mxu0 %v1316_v63 }
  0x79   : > { %890 = vmatmul.mubr.bf16.vlgmr.msra.gmra.mrb[4].mxu1 %v1317_v1  ;;  %776 = vmatpush1.bf16.msra.mxu0 %v1314_v0 }
  0x7a   : > { %777 = vmatprep.subr.bf16.mxu0 %v1320_v2 }
  0x7d   : > { %778 = vmatpush1.bf16.msra.mxu0 %v1318_v3 }
  0x7e   : > { %779 = vmatprep.subr.bf16.mxu0 %v1323_v4 }
  0x81   : > { %780 = vmatpush1.bf16.msra.mxu0 %v1321_v5 }
  0x82   : > { %781 = vmatprep.subr.bf16.mxu0 %v1326_v6 }
  0x85   : > { %782 = vmatpush1.bf16.msra.mxu0 %v1324_v7 }
  0x86   : > { %783 = vmatprep.subr.bf16.mxu0 %v1329_v8 }
  0x89   : > { %784 = vmatpush1.bf16.msra.mxu0 %v1327_v9 }
  0x8a   : > { %785 = vmatprep.subr.bf16.mxu0 %v1332_v10 }
  0x8d   : > { %786 = vmatpush1.bf16.msra.mxu0 %v1330_v11 }
  0x8e   : > { %787 = vmatprep.subr.bf16.mxu0 %v1335_v12 }
  0x91   : > { %788 = vmatpush1.bf16.msra.mxu0 %v1333_v13 }
  0x92   : > { %789 = vmatprep.subr.bf16.mxu0 %v1338_v14 }
  0x95   : > { %790 = vmatpush1.bf16.msra.mxu0 %v1336_v15 }
  0x98   : > { %806 = vmatmul.mubr.bf16.vlgmr.msra.gmra.mrb[0].mxu0 %v1317_v1 }
 0x127   : > { %v1177_v16 = vpop.f32.mrb[0].mxu1 }
 0x128   : > { %v1178_v17 = vpop.f32.mrb[1].mxu1 }
 0x129   : > { %v1179_v18 = vadd.f32 %v1178_v17, %v1177_v16  ;;  %v1180_v19 = vpop.f32.mrb[2].mxu1 }
 0x12a   : > { %v1181_v20 = vpop.f32.mrb[3].mxu1 }
 0x12b   : > { %v1182_v21 = vadd.f32 %v1181_v20, %v1180_v19 }
 0x14c   : > { %v891_v27 = vpop.f32.mrb[4].mxu1 }
 0x14d   : > { %v892_v28 = vadd.f32 %v1179_v18, %v891_v27  ;;  %v893_v29 = vpop.f32.mrb[5].mxu1 }
 0x14e   : > { %v894_v30 = vpop.f32.mrb[6].mxu1 }
 0x14f   : > { %v914_v31 = vmul.f32 %v913_v26, %v892_v28  ;;  %v895_v32 = vadd.f32 %v1182_v21, %v894_v30  ;;  %v896_v33 = vpop.f32.mrb[7].mxu1  ;;  %v903_v39 = vmul.f32 %v902_v37, %v892_v28 }
 0x151   : > { %1154 = vst [vmem:[%s1629_s23 + $0x8] sm:$0xff] %v914_v31  ;;  %v917_v34 = vmul.f32 %v913_v26, %v895_v32  ;;  %v906_v43 = vmul.f32 %v902_v37, %v895_v32 }
 0x153   : > { %1155 = vst [vmem:[%s1629_s23 + $0x20] sm:$0xff] %v917_v34 }
 0x158   : > { %v979_v51 = vld [vmem:[%s1629_s23 + $0x8] sm:$0xff] (%p1670_p9) }
 0x159   : > { %980 = vst [vmem:[%s939_s28 + $0x10] sm:$0xff] (%p1670_p9), %v979_v51 }
 0x15a   : > { %v985_v54 = vld [vmem:[%s1629_s23 + $0x20] sm:$0xff] (%p1670_p9) }
 0x15b   : > { %986 = vst [vmem:[%s939_s28 + $0x40] sm:$0xff] (%p1670_p9), %v985_v54 }
 0x16b   : > { %v807_v40 = vpop.f32.mrb[0].mxu0  ;;  %937 = sbr.rel (!%p1670_p9) target bundleno = 378 (0x17a), region = 40 }
 0x16c   : > { %v904_v41 = vadd.f32 %v903_v39, %v807_v40  ;;  %v809_v42 = vpop.f32.mrb[1].mxu0 }
 0x16d   : > { %v927_v44 = vmul.f32 %v923_v38, %v809_v42  ;;  %v811_v45 = vpop.f32.mrb[2].mxu0 }
 0x16e   : > { %905 = vst [vmem:[%s1629_s23] sm:$0xff] %v904_v41  ;;  %v907_v46 = vadd.f32 %v906_v43, %v811_v45  ;;  %v813_v47 = vpop.f32.mrb[3].mxu0 }
 0x16f   : > { %v928_v48 = vsub.f32 0.0, %v927_v44  ;;  %v924_v49 = vmul.f32 %v923_v38, %v813_v47 }
 0x170   : > { %1153 = vst [vmem:[%s1629_s23 + $0x18] sm:$0xff] %v907_v46 }
 0x171   : > { %1157 = vst [vmem:[%s1629_s23 + $0x28] sm:$0xff] %v928_v48  ;;  %1156 = vst [vmem:[%s1629_s23 + $0x10] sm:$0xff] %v924_v49 }
 0x175   : > { %v977_v50 = vld [vmem:[%s1629_s23] sm:$0xff] }
 0x176   : > { %978 = vst [vmem:[%s939_s28] sm:$0xff] %v977_v50 }
 0x177   : > { %v983_v53 = vld [vmem:[%s1629_s23 + $0x18] sm:$0xff] }
 0x178   : > { %v981_v52 = vld [vmem:[%s1629_s23 + $0x10] sm:$0xff]  ;;  %v987_v55 = vld [vmem:[%s1629_s23 + $0x28] sm:$0xff]  ;;  %984 = vst [vmem:[%s939_s28 + $0x30] sm:$0xff] %v983_v53 }
 0x179   : > { %982 = vst [vmem:[%s939_s28 + $0x20] sm:$0xff] %v981_v52  ;;  %988 = vst [vmem:[%s939_s28 + $0x50] sm:$0xff] %v987_v55 }
 0x17a PF: > { %p13_p10 = scmp.ge.s32.totalorder %s1451_s17, 4   ;;  %s1671_s12 = smov %s1395_s13 }
 0x17b   : > { %s1672_s13 = smov %s1399_s14  ;;  %s1673_s14 = smov %s1461_s20 }
 0x17c   : > { %s1674_s15 = smov %s1451_s17  ;;  %15 = sbr.rel (!%p13_p10) target bundleno = 3 (0x3), region = 118 }
 0x183   :  { %1004 = vsyncpa [#allocation3], 1 }
 0x184   :  { %1006 = vsyncpa [#allocation3 + $0x1], 1 }

</bundles_post_ra>
